<compile_context>
chip_gen: v6e
topology: v6e:2x2x1
jax: 0.10.0
libtpu: 0.0.40
codegen_flags: <defaults>
</compile_context>

<pallas_src>
import functools

import jax
import jax.numpy as jnp
from jax.experimental import pallas as pl
from jax.experimental.pallas import tpu as pltpu

LANES = 128
TARGET_BLOCK_BYTES = 4 * 1024 * 1024     # per-input, per-grid-step DMA size
VMEM_LIMIT_BYTES = 48 * 1024 * 1024      # fits v5e/v6e/v7x (v7x physical = 64 MiB)


def _round_up(x, m):
    return ((x + m - 1) // m) * m


def _round_down(x, m):
    return (x // m) * m


def _num_tensorcores():
    """Best-effort TensorCore count of the local device (1 if unknown)."""
    try:
        dev = jax.devices()[0]
    except Exception:
        return 1
    for attr in ("num_cores", "core_count"):
        try:
            v = getattr(dev, attr, None)
            if v is not None and int(v) > 0:
                return max(1, min(2, int(v)))
        except Exception:
            pass
    try:
        info = pltpu.get_tpu_info()
        for attr in ("num_cores", "core_count", "num_tensorcores"):
            v = getattr(info, attr, None)
            if v is not None and int(v) > 0:
                return max(1, min(2, int(v)))
    except Exception:
        pass
    return 1


def _rmse_reference(pre, target, eps):
    d = pre.astype(jnp.float32) - target.astype(jnp.float32)
    return jnp.sqrt(jnp.mean(d * d) + jnp.float32(eps))


def _rmse_sumsq_kernel(pre_ref, tgt_ref, out_ref, acc_ref, *, rows):
    """Per-core sum((pre - tgt)^2) over this core's slice of row-tiles."""
    c = pl.program_id(0)                    # core axis (parallel / core-parallel)
    i = pl.program_id(1)                    # sequential reduction axis
    tiles_per_core = pl.num_programs(1)
    block_rows = pre_ref.shape[0]

    @pl.when(i == 0)
    def _():
        acc_ref[...] = jnp.zeros_like(acc_ref)

    # UNCLAMPED logical tile index (the index_map clamps the DMA separately).
    tile_idx = c * tiles_per_core + i
    start = tile_idx * block_rows
    is_interior = start + block_rows <= rows     # whole block holds valid rows

    @pl.when(is_interior)
    def _():
        # Fast path: no iota, no compare, no where — pure VPU diff/square/add.
        d = pre_ref[...].astype(jnp.float32) - tgt_ref[...].astype(jnp.float32)
        acc_ref[...] += jnp.sum((d * d).reshape(block_rows // 8, 8, LANES), axis=0)

    @pl.when(jnp.logical_not(is_interior))
    def _():
        # Boundary (partial) tile or clamped duplicate: mask invalid rows.
        d = pre_ref[...].astype(jnp.float32) - tgt_ref[...].astype(jnp.float32)
        row_id = jax.lax.broadcasted_iota(jnp.int32, (block_rows, LANES), 0)
        valid = (start + row_id) < rows
        sq = jnp.where(valid, d * d, jnp.float32(0.0))
        acc_ref[...] += jnp.sum(sq.reshape(block_rows // 8, 8, LANES), axis=0)

    @pl.when(i == tiles_per_core - 1)
    def _():
        # Single cross-lane / cross-sublane reduce per core.
        out_ref[0, 0] = jnp.sum(acc_ref[...])


def rmse_loss(pre, target, eps=1e-06):
    assert pre.shape == target.shape, (pre.shape, target.shape)
    n_elems = pre.size

    itemsizes = (pre.dtype.itemsize, target.dtype.itemsize)
    align = max(8, 32 // min(itemsizes))          # sublane packing for both dtypes
    max_itemsize = max(itemsizes)

    # Kernel path requires a (rows, 128) view (free reshape, no copies).
    if n_elems % LANES != 0 or (n_elems // LANES) < align:
        # TODO(synk): keep ragged tails in-kernel via a manual-DMA 1-D HBM path;
        # this fused single-pass fallback avoids the padded-copy HBM traffic.
        return _rmse_reference(pre, target, eps)

    rows = n_elems // LANES
    pre2d = pre.reshape(rows, LANES)              # free: no pad, no copy
    tgt2d = target.reshape(rows, LANES)

    # Tile sizing: ~4 MiB of input bytes per step, sublane-aligned.
    max_block_rows = max(align,
                         _round_down(TARGET_BLOCK_BYTES // (LANES * max_itemsize), align))
    block_rows = min(max_block_rows, _round_down(rows, align))
    n_blocks = pl.cdiv(rows, block_rows)

    # Core split: only multi-core when there is real work to split.
    ncores_hw = _num_tensorcores()
    ncores = ncores_hw if (ncores_hw > 1 and n_blocks >= ncores_hw) else 1

    # Balance the split for small/medium tile counts (avoids a duplicated tile
    # of wasted DMA on one core).
    if ncores > 1 and n_blocks % ncores != 0 and n_blocks <= 64:
        total = _round_up(n_blocks, ncores)
        cand = _round_up(pl.cdiv(rows, total), align)
        if align <= cand < block_rows:
            block_rows = cand
            n_blocks = pl.cdiv(rows, block_rows)

    tiles_per_core = pl.cdiv(n_blocks, ncores)
    last_block = n_blocks - 1

    def tile_map(c, i):
        # Clamp so overhanging grid steps never DMA out of bounds; the kernel
        # masks their contribution using the UNCLAMPED logical index.
        return (jnp.minimum(c * tiles_per_core + i, last_block), 0)

    sems = ((pltpu.CORE_PARALLEL, pltpu.ARBITRARY) if ncores > 1
            else ("arbitrary", "arbitrary"))

    kernel = functools.partial(_rmse_sumsq_kernel, rows=rows)

    partial_ss = pl.pallas_call(
        kernel,
        out_shape=jax.ShapeDtypeStruct((ncores, 1), jnp.float32),
        grid=(ncores, tiles_per_core),
        in_specs=[
            pl.BlockSpec((block_rows, LANES), tile_map),
            pl.BlockSpec((block_rows, LANES), tile_map),
        ],
        out_specs=pl.BlockSpec((1, 1), lambda c, i: (c, 0),
                               memory_space=pltpu.MemorySpace.SMEM),
        scratch_shapes=[pltpu.VMEM((8, LANES), jnp.float32)],
        compiler_params=pltpu.CompilerParams(
            dimension_semantics=sems,
            vmem_limit_bytes=VMEM_LIMIT_BYTES),
    )(pre2d, tgt2d)

    total_ss = jnp.sum(partial_ss)
    return jnp.sqrt(total_ss / jnp.float32(n_elems) + jnp.float32(eps))


if __name__ == "__main__":
    key = jax.random.PRNGKey(0)
    k1, k2 = jax.random.split(key)
    # Shapes consistent with a generic regression use (e.g. NCHW feature map).
    pre = jax.random.normal(k1, (2, 4, 16, 16), dtype=jnp.float32)
    target = jax.random.normal(k2, (2, 4, 16, 16), dtype=jnp.float32)

    loss = rmse_loss(pre, target)
    jax.block_until_ready(loss)

    # Reference check (torch semantics: sqrt(mse + eps)).
    ref = jnp.sqrt(jnp.mean((pre - target) ** 2) + 1e-06)
    assert jnp.allclose(loss, ref, rtol=1e-5, atol=1e-6), (loss, ref)

    # Also exercise the ragged (non-multiple-of-128) fallback path.
    p2 = jax.random.normal(k1, (3, 5, 7), dtype=jnp.float32)
    t2 = jax.random.normal(k2, (3, 5, 7), dtype=jnp.float32)
    loss2 = rmse_loss(p2, t2)
    jax.block_until_ready(loss2)
    ref2 = jnp.sqrt(jnp.mean((p2 - t2) ** 2) + 1e-06)
    assert jnp.allclose(loss2, ref2, rtol=1e-5, atol=1e-6), (loss2, ref2)

    print("KERNEL_OK")
</pallas_src>

<mosaic_0001>
module attributes {stable_mosaic.version = 11 : i64} {
  func.func @_rmse_sumsq_kernel(%arg0: i32, %arg1: i32, %arg2: memref<16x128xf32, #tpu.memory_space<vmem>>, %arg3: memref<16x128xf32, #tpu.memory_space<vmem>>, %arg4: memref<1x1xf32, #tpu.memory_space<smem>>, %arg5: memref<8x128xf32, #tpu.memory_space<vmem>>) attributes {dimension_semantics = [#tpu.dimension_semantics<arbitrary>, #tpu.dimension_semantics<arbitrary>], iteration_bounds = array<i64: 1, 1>, scalar_prefetch = 0 : i64, scratch_operands = 1 : i64, tpu.core_type = #tpu.core_type<tc>, window_params = [{transform_indices = @transform_0, window_bounds = array<i64: 16, 128>}, {transform_indices = @transform_1, window_bounds = array<i64: 16, 128>}, {transform_indices = @transform_2, window_bounds = array<i64: 1, 1>}]} {
    %c0_i32 = arith.constant 0 : i32
    %0 = arith.cmpi eq, %arg1, %c0_i32 : i32
    %1 = arith.extui %0 : i1 to i32
    %c0_i32_0 = arith.constant 0 : i32
    %2 = arith.cmpi ne, %1, %c0_i32_0 : i32
    scf.if %2 {
      %cst = arith.constant 0.000000e+00 : f32
      %16 = vector.broadcast %cst : f32 to vector<8x128xf32>
      %c0 = arith.constant 0 : index
      %c0_7 = arith.constant 0 : index
      %17 = vector.load %arg5[%c0, %c0_7] : memref<8x128xf32, #tpu.memory_space<vmem>>, vector<8x128xf32>
      tpu.vector_store %arg5[%c0, %c0_7], %16 {strides = array<i32>} : memref<8x128xf32, #tpu.memory_space<vmem>>, vector<8x128xf32>,
    } else {
    }
    %c1_i32 = arith.constant 1 : i32
    %3 = arith.muli %arg0, %c1_i32 : i32
    %4 = arith.addi %3, %arg1 : i32
    %c16_i32 = arith.constant 16 : i32
    %5 = arith.muli %4, %c16_i32 : i32
    %c16_i32_1 = arith.constant 16 : i32
    %6 = arith.addi %5, %c16_i32_1 : i32
    %c16_i32_2 = arith.constant 16 : i32
    %7 = arith.cmpi sle, %6, %c16_i32_2 : i32
    %8 = arith.extui %7 : i1 to i32
    %c0_i32_3 = arith.constant 0 : i32
    %9 = arith.cmpi ne, %8, %c0_i32_3 : i32
    scf.if %9 {
      %c0 = arith.constant 0 : index
      %c0_7 = arith.constant 0 : index
      %16 = vector.load %arg2[%c0, %c0_7] : memref<16x128xf32, #tpu.memory_space<vmem>>, vector<16x128xf32>
      %c0_8 = arith.constant 0 : index
      %c0_9 = arith.constant 0 : index
      %17 = vector.load %arg3[%c0_8, %c0_9] : memref<16x128xf32, #tpu.memory_space<vmem>>, vector<16x128xf32>
      %18 = arith.subf %16, %17 : vector<16x128xf32>
      %c0_10 = arith.constant 0 : index
      %c0_11 = arith.constant 0 : index
      %19 = vector.load %arg5[%c0_10, %c0_11] : memref<8x128xf32, #tpu.memory_space<vmem>>, vector<8x128xf32>
      %20 = arith.mulf %18, %18 : vector<16x128xf32>
      %21 = vector.shape_cast %20 : vector<16x128xf32> to vector<2x8x128xf32>
      %cst = arith.constant dense<0.000000e+00> : vector<8x128xf32>
      %22 = vector.multi_reduction <add>, %21, %cst [0] : vector<2x8x128xf32> to vector<8x128xf32>
      %23 = arith.addf %19, %22 : vector<8x128xf32>
      %c0_12 = arith.constant 0 : index
      %c0_13 = arith.constant 0 : index
      %24 = vector.load %arg5[%c0_12, %c0_13] : memref<8x128xf32, #tpu.memory_space<vmem>>, vector<8x128xf32>
      tpu.vector_store %arg5[%c0_12, %c0_13], %23 {strides = array<i32>} : memref<8x128xf32, #tpu.memory_space<vmem>>, vector<8x128xf32>,
    } else {
    }
    %true = arith.constant true
    %10 = arith.xori %7, %true : i1
    %11 = arith.extui %10 : i1 to i32
    %c0_i32_4 = arith.constant 0 : i32
    %12 = arith.cmpi ne, %11, %c0_i32_4 : i32
    scf.if %12 {
      %c0 = arith.constant 0 : index
      %c0_7 = arith.constant 0 : index
      %16 = vector.load %arg2[%c0, %c0_7] : memref<16x128xf32, #tpu.memory_space<vmem>>, vector<16x128xf32>
      %c0_8 = arith.constant 0 : index
      %c0_9 = arith.constant 0 : index
      %17 = vector.load %arg3[%c0_8, %c0_9] : memref<16x128xf32, #tpu.memory_space<vmem>>, vector<16x128xf32>
      %18 = arith.subf %16, %17 : vector<16x128xf32>
      %19 = tpu.iota {dimensions = array<i32: 0>} : vector<16x128xi32>
      %20 = vector.broadcast %5 : i32 to vector<16x128xi32>
      %21 = arith.addi %20, %19 : vector<16x128xi32>
      %c16_i32_10 = arith.constant 16 : i32
      %22 = vector.broadcast %c16_i32_10 : i32 to vector<16x128xi32>
      %23 = arith.cmpi slt, %21, %22 : vector<16x128xi32>
      %24 = arith.mulf %18, %18 : vector<16x128xf32>
      %cst = arith.constant 0.000000e+00 : f32
      %25 = vector.broadcast %cst : f32 to vector<16x128xf32>
      %26 = arith.select %23, %24, %25 : vector<16x128xi1>, vector<16x128xf32>
      %c0_11 = arith.constant 0 : index
      %c0_12 = arith.constant 0 : index
      %27 = vector.load %arg5[%c0_11, %c0_12] : memref<8x128xf32, #tpu.memory_space<vmem>>, vector<8x128xf32>
      %28 = vector.shape_cast %26 : vector<16x128xf32> to vector<2x8x128xf32>
      %cst_13 = arith.constant dense<0.000000e+00> : vector<8x128xf32>
      %29 = vector.multi_reduction <add>, %28, %cst_13 [0] : vector<2x8x128xf32> to vector<8x128xf32>
      %30 = arith.addf %27, %29 : vector<8x128xf32>
      %c0_14 = arith.constant 0 : index
      %c0_15 = arith.constant 0 : index
      %31 = vector.load %arg5[%c0_14, %c0_15] : memref<8x128xf32, #tpu.memory_space<vmem>>, vector<8x128xf32>
      tpu.vector_store %arg5[%c0_14, %c0_15], %30 {strides = array<i32>} : memref<8x128xf32, #tpu.memory_space<vmem>>, vector<8x128xf32>,
    } else {
    }
    %c0_i32_5 = arith.constant 0 : i32
    %13 = arith.cmpi eq, %arg1, %c0_i32_5 : i32
    %14 = arith.extui %13 : i1 to i32
    %c0_i32_6 = arith.constant 0 : i32
    %15 = arith.cmpi ne, %14, %c0_i32_6 : i32
    scf.if %15 {
      %c0 = arith.constant 0 : index
      %c0_7 = arith.constant 0 : index
      %16 = vector.load %arg5[%c0, %c0_7] : memref<8x128xf32, #tpu.memory_space<vmem>>, vector<8x128xf32>
      %17 = vector.shape_cast %16 : vector<8x128xf32> to vector<1x8x128xf32>
      %cst = arith.constant dense<0.000000e+00> : vector<1xf32>
      %18 = vector.multi_reduction <add>, %17, %cst [1, 2] : vector<1x8x128xf32> to vector<1xf32>
      %19 = vector.shape_cast %18 : vector<1xf32> to vector<1x1x1xf32>
      %20 = vector.extract %19[0, 0, 0] : f32 from vector<1x1x1xf32>
      %c0_8 = arith.constant 0 : index
      %c0_9 = arith.constant 0 : index
      %21 = memref.load %arg4[%c0_8, %c0_9] : memref<1x1xf32, #tpu.memory_space<smem>>
      memref.store %20, %arg4[%c0_8, %c0_9] : memref<1x1xf32, #tpu.memory_space<smem>>
    } else {
    }
    return
  }
  func.func @transform_0(%arg0: i32, %arg1: i32) -> (i32, i32) {
    %c1_i32 = arith.constant 1 : i32
    %0 = arith.muli %arg0, %c1_i32 : i32
    %1 = arith.addi %0, %arg1 : i32
    %c0_i32 = arith.constant 0 : i32
    %2 = arith.minsi %1, %c0_i32 : i32
    %c0_i32_0 = arith.constant 0 : i32
    %c0_i32_1 = arith.constant 0 : i32
    return %2, %c0_i32_0 : i32, i32
  }
  func.func @transform_1(%arg0: i32, %arg1: i32) -> (i32, i32) {
    %c1_i32 = arith.constant 1 : i32
    %0 = arith.muli %arg0, %c1_i32 : i32
    %1 = arith.addi %0, %arg1 : i32
    %c0_i32 = arith.constant 0 : i32
    %2 = arith.minsi %1, %c0_i32 : i32
    %c0_i32_0 = arith.constant 0 : i32
    %c0_i32_1 = arith.constant 0 : i32
    return %2, %c0_i32_0 : i32, i32
  }
  func.func @transform_2(%arg0: i32, %arg1: i32) -> (i32, i32) {
    %c0_i32 = arith.constant 0 : i32
    %c0_i32_0 = arith.constant 0 : i32
    return %arg0, %c0_i32 : i32, i32
  }
}

</mosaic_0001>

<bundles_post_ra>
// kernel: tpu_custom_call.1
= control target key start
LH: loop header
LB: loop body
LE: loop exit
PB: predicated region body
PF: predicated region fallthrough
CT: control target
= control target key end

     0   :  { %7 = vsyncpa [#allocation4], 0  ;;  %s234_s0 = inlined_call_operand.hbm [shape: f32[16,128], index: 0, kind: input, shape index: {}]   ;;  %s235_s1 = inlined_call_operand.hbm [shape: f32[16,128], index: 1, kind: input, shape index: {}]   ;;  %s236_s2 = inlined_call_operand.hbm [shape: f32[1,1], index: 2, kind: output, shape index: {}]  }
   0x1   :  { %8 = vsyncpa [#allocation7], 0 }
   0x2   :  { %9 = vsyncpa [#allocation5], 0  ;;  %s205_s9 = smov [#allocation3]  }
   0x3   :  { %s21_s10 = sshll.u32 %s205_s9, 4  ;;  %s22_s10 = int_to_ptr.vmem [resolvable:$true] %s21_s10 }
   0x4   :  { %s159_s11 = scalar_lea.vmem %s22_s10, 256  ;;  %p164_p1 = scmp.lt.s32.totalorder %s22_s10, %s22_s10 }
   0x5   :  { %p160_p0 = scmp.ne.s32.totalorder %s22_s10, %s159_s11  ;;  %p165_p2 = scmp.lt.s32.totalorder %s159_s11, %s159_s11 }
   0x7   :  { %p166_p3 = por %p165_p2, %p164_p1 }
   0x9   :  { %p167_p4 = pnand %p166_p3, %p160_p0 }
   0xb   :  { %170 = shalt.err (!%p167_p4)
}
   0xc   :  { %s206_s12 = smov 128   ;;  %s207_s13 = smov 8  }
   0xd   :  { %27 = dma.hbm_to_vmem [thread:$0]  %s234_s0, 256, %s22_s10, [#allocation4], %s206_s12, %s206_s12, %s207_s13  }
   0xe   :  { %s208_s16 = smov [#allocation6]  }
   0xf   :  { %s39_s17 = sshll.u32 %s208_s16, 4  ;;  %s40_s17 = int_to_ptr.vmem [resolvable:$true] %s39_s17 }
  0x10   :  { %s179_s18 = scalar_lea.vmem %s40_s17, 256  ;;  %p184_p6 = scmp.lt.s32.totalorder %s40_s17, %s40_s17 }
  0x11   :  { %p180_p5 = scmp.ne.s32.totalorder %s40_s17, %s179_s18  ;;  %p185_p7 = scmp.lt.s32.totalorder %s179_s18, %s179_s18 }
  0x13   :  { %p186_p8 = por %p185_p7, %p184_p6 }
  0x15   :  { %p187_p9 = pnand %p186_p8, %p180_p5 }
  0x17   :  { %190 = shalt.err (!%p187_p9)
}
  0x18   :  { %45 = dma.hbm_to_vmem [thread:$0]  %s235_s1, 256, %s40_s17, [#allocation7], %s206_s12, %s206_s12, %s207_s13  }
  0x19   :  { %199 = dma.done.wait [#allocation4], 256  }
  0x1a   :  { %200 = vsyncadd [#allocation4], 4294967040 }
  0x1b   :  { %201 = dma.done.wait [#allocation7], 256  }
  0x1c   :  { %202 = vsyncadd [#allocation7], 4294967040  ;;  %v72_v0 = vld [vmem:[#allocation3] sm:$0xff]  ;;  %v73_v1 = vld [vmem:[#allocation3 + $0x8] sm:$0xff]  ;;  %s209_s1 = smov [#allocation8]  }
  0x1d   :  { %v74_v2 = vld [vmem:[#allocation6] sm:$0xff]  ;;  %v75_v3 = vld [vmem:[#allocation6 + $0x8] sm:$0xff] }
  0x1e   :  { %v76_v4 = vsub.f32 %v72_v0, %v74_v2  ;;  %v77_v5 = vsub.f32 %v73_v1, %v75_v3 }
  0x20   :  { %v79_v6 = vmul.f32 %v76_v4, %v76_v4  ;;  %v80_v7 = vmul.f32 %v77_v5, %v77_v5 }
  0x22   :  { %v81_v8 = vadd.f32 %v80_v7, %v79_v6 }
  0x24   :  { %114 = vadd.xlane.f32.xlu0 %v81_v8 }
  0xad   :  { %v115_v9 = vpop.xlane.xlu0 %114 }
  0xae   :  { %v116_v10 = vrot.slane %v115_v9, 4 }
  0xb0   :  { %v117_v11 = vadd.f32 %v116_v10, %v115_v9 }
  0xb2   :  { %v118_v12 = vrot.slane %v117_v11, 2 }
  0xb4   :  { %v119_v13 = vadd.f32 %v118_v12, %v117_v11 }
  0xb6   :  { %v120_v14 = vrot.slane %v119_v13, 1 }
  0xb8   :  { %v121_v15 = vadd.f32 %v120_v14, %v119_v13 }
  0xba   :  { %144 = vpush %v121_v15 }
  0xeb   :  { %s145_s0 = spop %144 }
  0xec   :  { %124 = sst [smem:[#allocation8]] %s145_s0 }
  0xed   :  { %132 = dma.smem_to_hbm %s209_s1, 16, %s236_s2, [#allocation5]  }
  0xee   :  { %203 = dma.done.wait [#allocation5], 16  }
  0xef   :  { %204 = vsyncadd [#allocation5], 4294967280 }
  0xf0   :  { %136 = sfence }
  0xf1   :  { %137 = vsyncpa [#allocation4], 1 }
  0xf2   :  { %138 = vsyncpa [#allocation7], 1 }
  0xf3   :  { %139 = vsyncpa [#allocation5], 1 }

</bundles_post_ra>
